<compile_context>
chip_gen: v6e
topology: v6e:2x2x1
jax: 0.10.0
libtpu: 0.0.40
codegen_flags: <defaults>
</compile_context>

<pallas_src>
import jax
import jax.numpy as jnp
from jax.experimental import pallas as pl
from jax.experimental.pallas import tpu as pltpu

# Deterministic "fn" parameters (would come from the wrapped module's init).
FN_GAIN = 1.5
FN_BIAS = 0.25


def _random_apply_kernel(flags_ref, x_ref, o_ref):
    # flags_ref : VMEM (TB, 1) f32   -- 1.0 => apply fn, 0.0 => identity
    # x_ref     : VMEM (TB, HW)      -- channel-0 rows (original dtype)
    # o_ref     : VMEM (TB, HW) f32  -- channel-0 output rows
    img = x_ref[...].astype(jnp.float32)
    transformed = jnp.tanh(FN_GAIN * img + FN_BIAS)   # EUP slot
    apply_fn = flags_ref[...] > 0.5                   # (TB, 1) bool, row-broadcast
    o_ref[...] = jnp.where(apply_fn, transformed, img)


def _pick_batch_tile(B, row_bytes, target_bytes=4 << 20):
    """Largest batch tile that (a) divides B, (b) satisfies the (8,128) rule
    (multiple of 8 or == B), and (c) keeps the per-step in+out tile ~<= 4 MiB
    (so double-buffered VMEM stays well under the scoped limit on all chips)."""
    if B * row_bytes <= target_bytes:
        return B
    for cand in range(B - 1, 0, -1):
        if B % cand != 0:
            continue
        if cand % 8 != 0:
            continue
        if cand * row_bytes <= target_bytes:
            return cand
    # Fallback: whole batch (always layout-legal since it equals the full dim).
    return B


def random_apply(x, p, key):
    """Pallas implementation of RandomApply.forward.

    Args:
      x:   (B, C, H, W) array (any float dtype).
      p:   probability of applying fn to each batch element.
      key: jax PRNG key driving the per-sample decisions.

    Returns:
      (B, C, H, W) float32 array (channels 1..C-1 are zero, like torch.zeros).
    """
    B, C, H, W = x.shape
    HW = H * W

    # Lane-dense channel-0 slab, original dtype (cast happens in-kernel).
    x0 = x[:, 0].reshape(B, HW)

    # Per-sample Bernoulli(p) decisions (replaces python `random.random() < p`).
    flags = (jax.random.uniform(key, (B, 1)) < p).astype(jnp.float32)

    in_bytes = B * HW * x0.dtype.itemsize
    out_bytes = B * HW * 4
    row_bytes = HW * (x0.dtype.itemsize + 4)   # in-row + out-row per batch elem
    tb = _pick_batch_tile(B, row_bytes)
    grid = (B // tb,)

    cost = pl.CostEstimate(
        flops=2 * B * HW,               # affine gain*x + bias
        transcendentals=B * HW,         # tanh
        bytes_accessed=in_bytes + out_bytes + B * 4,
    )

    y0 = pl.pallas_call(
        _random_apply_kernel,
        out_shape=jax.ShapeDtypeStruct((B, HW), jnp.float32),
        grid=grid,
        in_specs=[
            pl.BlockSpec((tb, 1), lambda i: (i, 0)),    # flags
            pl.BlockSpec((tb, HW), lambda i: (i, 0)),   # channel-0 rows
        ],
        out_specs=pl.BlockSpec((tb, HW), lambda i: (i, 0)),
        compiler_params=pltpu.CompilerParams(
            dimension_semantics=("parallel",),
        ),
        cost_estimate=cost,
    )(flags, x0)

    y0 = y0.reshape(B, 1, H, W)
    if C == 1:
        return y0
    # Channels 1..C-1 are exactly zero (torch.zeros semantics) — assembled
    # with a cheap XLA concat instead of wasting kernel stores.
    zeros_rest = jnp.zeros((B, C - 1, H, W), jnp.float32)
    return jnp.concatenate([y0, zeros_rest], axis=1)


if __name__ == "__main__":
    key = jax.random.PRNGKey(0)
    k_x, k_dec = jax.random.split(key)

    B, C, H, W = 2, 4, 16, 16
    x = jax.random.normal(k_x, (B, C, H, W), dtype=jnp.float32)
    p = 0.5

    y = random_apply(x, p, k_dec)
    y = jax.block_until_ready(y)

    # Reference check in plain JAX (same flags, same fn).
    flags = jax.random.uniform(k_dec, (B, 1)) < p           # (B, 1)
    x0_f32 = x[:, 0].astype(jnp.float32)
    ch0 = jnp.where(flags[:, :, None],                      # (B, 1, 1)
                    jnp.tanh(FN_GAIN * x0_f32 + FN_BIAS),
                    x0_f32)
    ref = jnp.zeros((B, C, H, W), jnp.float32).at[:, 0].set(ch0)

    assert y.shape == (B, C, H, W) and y.dtype == jnp.float32
    assert jnp.allclose(y, ref, atol=1e-6), "mismatch vs reference"
    print("KERNEL_OK")
</pallas_src>

<mosaic_0001>
module attributes {stable_mosaic.version = 11 : i64} {
  func.func @_random_apply_kernel(%arg0: i32, %arg1: memref<2x1xf32, #tpu.memory_space<vmem>>, %arg2: memref<2x256xf32, #tpu.memory_space<vmem>>, %arg3: memref<2x256xf32, #tpu.memory_space<vmem>>) attributes {dimension_semantics = [#tpu.dimension_semantics<parallel>], iteration_bounds = array<i64: 1>, scalar_prefetch = 0 : i64, scratch_operands = 0 : i64, tpu.core_type = #tpu.core_type<tc>, window_params = [{transform_indices = @transform_0, window_bounds = array<i64: 2, 1>}, {transform_indices = @transform_1, window_bounds = array<i64: 2, 256>}, {transform_indices = @transform_2, window_bounds = array<i64: 2, 256>}]} {
    %c0 = arith.constant 0 : index
    %c0_0 = arith.constant 0 : index
    %0 = vector.load %arg2[%c0, %c0_0] : memref<2x256xf32, #tpu.memory_space<vmem>>, vector<2x256xf32>
    %cst = arith.constant 1.500000e+00 : f32
    %1 = vector.broadcast %cst : f32 to vector<2x256xf32>
    %2 = arith.mulf %1, %0 : vector<2x256xf32>
    %cst_1 = arith.constant 2.500000e-01 : f32
    %3 = vector.broadcast %cst_1 : f32 to vector<2x256xf32>
    %4 = arith.addf %2, %3 : vector<2x256xf32>
    %5 = math.tanh %4 : vector<2x256xf32>
    %c0_2 = arith.constant 0 : index
    %c0_3 = arith.constant 0 : index
    %6 = vector.load %arg1[%c0_2, %c0_3] : memref<2x1xf32, #tpu.memory_space<vmem>>, vector<2x1xf32>
    %cst_4 = arith.constant 5.000000e-01 : f32
    %7 = vector.broadcast %cst_4 : f32 to vector<2x1xf32>
    %8 = arith.cmpf ogt, %6, %7 : vector<2x1xf32>
    %9 = vector.shape_cast %8 : vector<2x1xi1> to vector<2x1xi1>
    %10 = vector.broadcast %9 : vector<2x1xi1> to vector<2x256xi1>
    %11 = arith.select %10, %5, %0 : vector<2x256xi1>, vector<2x256xf32>
    %c0_5 = arith.constant 0 : index
    %c0_6 = arith.constant 0 : index
    %12 = vector.load %arg3[%c0_5, %c0_6] : memref<2x256xf32, #tpu.memory_space<vmem>>, vector<2x256xf32>
    tpu.vector_store %arg3[%c0_5, %c0_6], %11 {strides = array<i32>} : memref<2x256xf32, #tpu.memory_space<vmem>>, vector<2x256xf32>,
    return
  }
  func.func @transform_0(%arg0: i32) -> (i32, i32) {
    %c0_i32 = arith.constant 0 : i32
    %c0_i32_0 = arith.constant 0 : i32
    return %arg0, %c0_i32 : i32, i32
  }
  func.func @transform_1(%arg0: i32) -> (i32, i32) {
    %c0_i32 = arith.constant 0 : i32
    %c0_i32_0 = arith.constant 0 : i32
    return %arg0, %c0_i32 : i32, i32
  }
  func.func @transform_2(%arg0: i32) -> (i32, i32) {
    %c0_i32 = arith.constant 0 : i32
    %c0_i32_0 = arith.constant 0 : i32
    return %arg0, %c0_i32 : i32, i32
  }
}

</mosaic_0001>

<bundles_post_ra>
// kernel: tpu_custom_call.1
= control target key start
LH: loop header
LB: loop body
LE: loop exit
PB: predicated region body
PF: predicated region fallthrough
CT: control target
= control target key end

     0   :  { %v102_v1 = vmov 0   ;;  %s129_s0 = inlined_call_operand.vmem [shape: f32[2,1], index: 0, kind: input, shape index: {}]   ;;  %s130_s1 = inlined_call_operand.vmem [shape: f32[2,256], index: 1, kind: input, shape index: {}]   ;;  %s131_s2 = inlined_call_operand.hbm [shape: f32[2,256], index: 2, kind: output, shape index: {}]  }
   0x1   :  { %v16_v0 = vld [vmem:[%s129_s0] sm:$0x3]  ;;  %77 = vset.pattern.permute.xlu0 %v102_v1 }
   0x2   :  { %vm17_vm0 = vcmp.gt.f32.partialorder %v16_v0, 0.5 }
   0x3   :  { %7 = vsyncpa [#allocation3], 0  ;;  %v18_v2 = vsel %vm17_vm0, 1, %v102_v1  ;;  %v12_v3 = vld [vmem:[%s130_s1] sm:$0xf]  ;;  %v27_v8 = vlaneseq  ;;  %s104_s0 = smov [#allocation2]  }
   0x4   :  { %20 = vperm.xlu0 %77, %v18_v2   ;;  %v13_v4 = vmul.f32 1.5, %v12_v3  ;;  %v103_v6 = vmov 1983009808   ;;  %s65_s13 = sshll.u32 %s104_s0, 4  ;;  %s66_s13 = int_to_ptr.vmem [resolvable:$true] %s65_s13 }
   0x5   :  { %v25_v7 = vunpack.c.l.s4 %v103_v6  ;;  %v28_v10 = vshrl.u32 %v27_v8, 7  ;;  %s80_s1 = scalar_lea.vmem %s66_s13, 64  ;;  %p85_p1 = scmp.lt.s32.totalorder %s66_s13, %s66_s13 }
   0x6   :  { %v14_v5 = vadd.f32 0.25, %v13_v4  ;;  %p81_p0 = scmp.ne.s32.totalorder %s66_s13, %s80_s1  ;;  %p86_p2 = scmp.lt.s32.totalorder %s80_s1, %s80_s1 }
   0x7   :  { %v26_v9 = vunpack.c.0.s8 %v25_v7 }
   0x8   :  { %78 = vtanh.f32 %v14_v5  ;;  %p87_p3 = por %p86_p2, %p85_p1 }
   0x9   :  { %v29_v11 = vsub.s32 %v26_v9, %v28_v10 }
   0xa   :  { %p88_p4 = pnand %p87_p3, %p81_p0 }
   0xb   :  { %v41_v14 = vrot.slane %v12_v3, %v29_v11 }
   0xd   :  { %v42_v16 = vcombine.high %v41_v14, %v41_v14 }
  0x15   :  { %v79_v12 = vpop.eup %78 }
  0x16   :  { %v30_v13 = vrot.slane %v79_v12, %v29_v11 }
  0x18   :  { %v31_v15 = vcombine.high %v30_v13, %v30_v13 }
  0x7f   :  { %v21_v17 = vpop.permute.xlu0 %20 }
  0x80   :  { %vm22_vm1 = vcmp.eq.s32.totalorder %v21_v17, 1 }
  0x81   :  { %v45_v18 = vsel %vm22_vm1, %v30_v13, %v41_v14  ;;  %v46_v19 = vsel %vm22_vm1, %v31_v15, %v42_v16 }
  0x82   :  { %v49_v20 = vcombine.low %v45_v18, %v46_v19 }
  0x84   :  { %73 = vst.sshfl [vmem:[#allocation2] sm:$0x33 pattern:$0x76325410] %v49_v20 }
  0x85   :  { %91 = shalt.err (!%p88_p4)
}
  0x86   :  { %68 = dma.vmem_to_hbm [thread:$0]  %s66_s13, 64, %s131_s2, [#allocation3]  }
  0x87   :  { %100 = dma.done.wait [#allocation3], 64  }
  0x88   :  { %101 = vsyncadd [#allocation3], 4294967232 }
  0x89   :  { %72 = vsyncpa [#allocation3], 1 }

</bundles_post_ra>
